<compile_context>
chip_gen: v6e
topology: v6e:2x2x1
jax: 0.10.0
libtpu: 0.0.40
codegen_flags: <defaults>
</compile_context>

<pallas_src>
import jax
import jax.numpy as jnp
from jax.experimental import pallas as pl
from jax.experimental.pallas import tpu as pltpu


def _parallel2d_kernel(xcol_ref, w_ref, o_ref):
    # xcol_ref: (1, 9*Cin, HW)  im2col patches of one batch element, HW in lanes
    # w_ref:    (Cout, 9*Cin)   conv weight, packed to match the im2col order
    # o_ref:    (1, Cout, HW)   output (lane-dense)
    cin = w_ref.shape[1] // 9
    hw = xcol_ref.shape[2]
    inv_n = 1.0 / hw

    xcol = xcol_ref[0]                                # (9*Cin, HW)

    # ---- Branch A: 3x3 conv (stride 1, pad 1) as one MXU matmul.
    # Conv bias omitted: it is removed exactly by the affine-free
    # InstanceNorm applied to the sum below.
    y1 = jnp.dot(w_ref[...], xcol,
                 preferred_element_type=jnp.float32)  # (Cout, HW)

    # ---- Branch B: InstanceNorm2d(x), eps=1e-5, biased variance.
    # x is the center (dh=1, dw=1) patch of the im2col tensor.
    x = xcol[4 * cin:5 * cin, :]                      # (Cin, HW)
    s1 = jnp.sum(x, axis=1, keepdims=True)            # single-pass stats
    s2 = jnp.sum(x * x, axis=1, keepdims=True)
    mx = s1 * inv_n
    vx = s2 * inv_n - mx * mx
    y2 = (x - mx) * jax.lax.rsqrt(vx + 1e-5)          # (Cin, HW)

    y = y1 + y2                                       # Cin == Cout (module req.)

    # ---- Second InstanceNorm2d + ReLU (single-pass stats again).
    t1 = jnp.sum(y, axis=1, keepdims=True)
    t2 = jnp.sum(y * y, axis=1, keepdims=True)
    my = t1 * inv_n
    vy = t2 * inv_n - my * my
    z = (y - my) * jax.lax.rsqrt(vy + 1e-5)
    o_ref[0] = jnp.maximum(z, 0.0)


def parallel2d_forward(x_nchw, wconv, bconv):
    """Parallel2dBlock forward (norm='in', relu, zero pad, k=3, s=1, p=1).

    x_nchw: (N, C, H, W); wconv: (C, C, 3, 3); bconv: (C,).  Returns (N, C, H, W).
    """
    N, C, H, W = x_nchw.shape
    Cout = wconv.shape[0]
    assert wconv.shape == (Cout, C, 3, 3) and Cout == C
    HW = H * W

    # Glue: zero pad + im2col, keeping HW as the (lane-dense) last axis.
    xpad = jnp.pad(x_nchw, ((0, 0), (0, 0), (1, 1), (1, 1)))
    patches = [xpad[:, :, dh:dh + H, dw:dw + W]
               for dh in range(3) for dw in range(3)]        # 9 x (N, C, H, W)
    xcol = jnp.stack(patches, axis=1).reshape(N, 9 * C, HW)  # (N, 9C, HW)
    # Weight packed to the same (k, c) ordering:  w[o, c, dh, dw] -> (o, k*C + c)
    wflat = jnp.transpose(wconv, (0, 2, 3, 1)).reshape(Cout, 9 * C)
    # bconv is intentionally NOT passed to the kernel (exact no-op before the
    # affine-free InstanceNorm); kept in the signature to mirror the module.
    del bconv

    out = pl.pallas_call(
        _parallel2d_kernel,
        out_shape=jax.ShapeDtypeStruct((N, Cout, HW), jnp.float32),
        grid_spec=pltpu.PrefetchScalarGridSpec(
            num_scalar_prefetch=0,
            grid=(N,),
            in_specs=[
                pl.BlockSpec((1, 9 * C, HW), lambda n: (n, 0, 0)),
                pl.BlockSpec((Cout, 9 * C), lambda n: (0, 0)),
            ],
            out_specs=pl.BlockSpec((1, Cout, HW), lambda n: (n, 0, 0)),
        ),
        compiler_params=pltpu.CompilerParams(
            dimension_semantics=("parallel",)),
    )(xcol, wflat)

    # HW was kept contiguous in channel-major order -> plain reshape, no transpose.
    return out.reshape(N, Cout, H, W)


def _instance_norm_ref(x, eps=1e-5):
    mean = x.mean(axis=(2, 3), keepdims=True)
    var = x.var(axis=(2, 3), keepdims=True)     # biased, like PyTorch
    return (x - mean) / jnp.sqrt(var + eps)


def _reference(x, wconv, bconv):
    """Pure-JAX reference mirroring the PyTorch Parallel2dBlock forward."""
    y1 = jax.lax.conv_general_dilated(
        x, wconv, window_strides=(1, 1), padding=((1, 1), (1, 1)),
        dimension_numbers=("NCHW", "OIHW", "NCHW"))
    y1 = y1 + bconv[None, :, None, None]        # conv bias (kept in reference)
    y2 = _instance_norm_ref(x)                  # self.norm = InstanceNorm2d
    y = y1 + y2
    z = _instance_norm_ref(y)                   # self.instance_norm
    return jnp.maximum(z, 0.0)                  # ReLU


if __name__ == "__main__":
    # Parallel2dBlock(input_dim=4, output_dim=4, kernel_size=3, stride=1,
    #                 padding=1, norm='in', activation='relu', pad_type='zero')
    N, C, H, W = 2, 4, 16, 16

    key = jax.random.PRNGKey(0)
    kx, kw, kb = jax.random.split(key, 3)

    x = jax.random.normal(kx, (N, C, H, W), dtype=jnp.float32)
    wconv = 0.1 * jax.random.normal(kw, (C, C, 3, 3), dtype=jnp.float32)
    bconv = 0.1 * jax.random.normal(kb, (C,), dtype=jnp.float32)

    out = parallel2d_forward(x, wconv, bconv)
    out = jax.block_until_ready(out)

    ref = _reference(x, wconv, bconv)
    assert out.shape == (N, C, H, W), out.shape
    assert jnp.allclose(out, ref, atol=1e-4, rtol=1e-4), (
        float(jnp.max(jnp.abs(out - ref))))

    print("KERNEL_OK")
</pallas_src>

<mosaic_0001>
module attributes {stable_mosaic.version = 11 : i64} {
  func.func @_parallel2d_kernel(%arg0: i32, %arg1: memref<1x36x256xf32, #tpu.memory_space<vmem>>, %arg2: memref<4x36xf32, #tpu.memory_space<vmem>>, %arg3: memref<1x4x256xf32, #tpu.memory_space<vmem>>) attributes {dimension_semantics = [#tpu.dimension_semantics<parallel>], iteration_bounds = array<i64: 2>, scalar_prefetch = 0 : i64, scratch_operands = 0 : i64, tpu.core_type = #tpu.core_type<tc>, window_params = [{transform_indices = @transform_0, window_bounds = array<i64: 1, 36, 256>}, {pipeline_mode = #tpu.pipeline_mode<synchronous>, transform_indices = @transform_1, window_bounds = array<i64: 4, 36>}, {transform_indices = @transform_2, window_bounds = array<i64: 1, 4, 256>}]} {
    %c0 = arith.constant 0 : index
    %c0_0 = arith.constant 0 : index
    %c0_1 = arith.constant 0 : index
    %0 = vector.load %arg1[%c0, %c0_0, %c0_1] : memref<1x36x256xf32, #tpu.memory_space<vmem>>, vector<1x36x256xf32>
    %1 = vector.shape_cast %0 : vector<1x36x256xf32> to vector<36x256xf32>
    %c0_2 = arith.constant 0 : index
    %c0_3 = arith.constant 0 : index
    %2 = vector.load %arg2[%c0_2, %c0_3] : memref<4x36xf32, #tpu.memory_space<vmem>>, vector<4x36xf32>
    %cst = arith.constant dense<0.000000e+00> : vector<4x256xf32>
    %3 = tpu.matmul %2, %1, %cst {dimension_numbers = #tpu.dot_dimension_numbers<[1], [0], [0], [1], [0, 0, 1, 1], [], []>} : vector<4x36xf32>, vector<36x256xf32>, vector<4x256xf32> -> vector<4x256xf32>
    %4 = vector.extract_strided_slice %1 {offsets = [16, 0], sizes = [4, 256], strides = [1, 1]} : vector<36x256xf32> to vector<4x256xf32>
    %cst_4 = arith.constant dense<0.000000e+00> : vector<4xf32>
    %5 = vector.multi_reduction <add>, %4, %cst_4 [1] : vector<4x256xf32> to vector<4xf32>
    %6 = vector.shape_cast %5 : vector<4xf32> to vector<4x1xf32>
    %7 = arith.mulf %4, %4 : vector<4x256xf32>
    %cst_5 = arith.constant dense<0.000000e+00> : vector<4xf32>
    %8 = vector.multi_reduction <add>, %7, %cst_5 [1] : vector<4x256xf32> to vector<4xf32>
    %9 = vector.shape_cast %8 : vector<4xf32> to vector<4x1xf32>
    %cst_6 = arith.constant 3.906250e-03 : f32
    %10 = vector.broadcast %cst_6 : f32 to vector<4x1xf32>
    %11 = arith.mulf %6, %10 : vector<4x1xf32>
    %cst_7 = arith.constant 3.906250e-03 : f32
    %12 = vector.broadcast %cst_7 : f32 to vector<4x1xf32>
    %13 = arith.mulf %9, %12 : vector<4x1xf32>
    %14 = arith.mulf %11, %11 : vector<4x1xf32>
    %15 = arith.subf %13, %14 : vector<4x1xf32>
    %16 = vector.broadcast %11 : vector<4x1xf32> to vector<4x256xf32>
    %17 = arith.subf %4, %16 : vector<4x256xf32>
    %cst_8 = arith.constant 9.99999974E-6 : f32
    %18 = vector.broadcast %cst_8 : f32 to vector<4x1xf32>
    %19 = arith.addf %15, %18 : vector<4x1xf32>
    %20 = math.rsqrt %19 : vector<4x1xf32>
    %21 = vector.broadcast %20 : vector<4x1xf32> to vector<4x256xf32>
    %22 = arith.mulf %17, %21 : vector<4x256xf32>
    %23 = arith.addf %3, %22 : vector<4x256xf32>
    %cst_9 = arith.constant dense<0.000000e+00> : vector<4xf32>
    %24 = vector.multi_reduction <add>, %23, %cst_9 [1] : vector<4x256xf32> to vector<4xf32>
    %25 = vector.shape_cast %24 : vector<4xf32> to vector<4x1xf32>
    %26 = arith.mulf %23, %23 : vector<4x256xf32>
    %cst_10 = arith.constant dense<0.000000e+00> : vector<4xf32>
    %27 = vector.multi_reduction <add>, %26, %cst_10 [1] : vector<4x256xf32> to vector<4xf32>
    %28 = vector.shape_cast %27 : vector<4xf32> to vector<4x1xf32>
    %cst_11 = arith.constant 3.906250e-03 : f32
    %29 = vector.broadcast %cst_11 : f32 to vector<4x1xf32>
    %30 = arith.mulf %25, %29 : vector<4x1xf32>
    %cst_12 = arith.constant 3.906250e-03 : f32
    %31 = vector.broadcast %cst_12 : f32 to vector<4x1xf32>
    %32 = arith.mulf %28, %31 : vector<4x1xf32>
    %33 = arith.mulf %30, %30 : vector<4x1xf32>
    %34 = arith.subf %32, %33 : vector<4x1xf32>
    %35 = vector.broadcast %30 : vector<4x1xf32> to vector<4x256xf32>
    %36 = arith.subf %23, %35 : vector<4x256xf32>
    %cst_13 = arith.constant 9.99999974E-6 : f32
    %37 = vector.broadcast %cst_13 : f32 to vector<4x1xf32>
    %38 = arith.addf %34, %37 : vector<4x1xf32>
    %39 = math.rsqrt %38 : vector<4x1xf32>
    %40 = vector.broadcast %39 : vector<4x1xf32> to vector<4x256xf32>
    %41 = arith.mulf %36, %40 : vector<4x256xf32>
    %cst_14 = arith.constant 0.000000e+00 : f32
    %42 = vector.broadcast %cst_14 : f32 to vector<4x256xf32>
    %43 = arith.maximumf %41, %42 : vector<4x256xf32>
    %c0_15 = arith.constant 0 : index
    %c0_16 = arith.constant 0 : index
    %c0_17 = arith.constant 0 : index
    %44 = vector.load %arg3[%c0_15, %c0_16, %c0_17] : memref<1x4x256xf32, #tpu.memory_space<vmem>>, vector<1x4x256xf32>
    %45 = vector.shape_cast %44 : vector<1x4x256xf32> to vector<4x256xf32>
    %46 = vector.shape_cast %43 : vector<4x256xf32> to vector<1x4x256xf32>
    tpu.vector_store %arg3[%c0_15, %c0_16, %c0_17], %46 {strides = array<i32>} : memref<1x4x256xf32, #tpu.memory_space<vmem>>, vector<1x4x256xf32>,
    return
  }
  func.func @transform_0(%arg0: i32) -> (i32, i32, i32) {
    %c0_i32 = arith.constant 0 : i32
    %c0_i32_0 = arith.constant 0 : i32
    %c0_i32_1 = arith.constant 0 : i32
    return %arg0, %c0_i32, %c0_i32_0 : i32, i32, i32
  }
  func.func @transform_1(%arg0: i32) -> (i32, i32) {
    %c0_i32 = arith.constant 0 : i32
    %c0_i32_0 = arith.constant 0 : i32
    %c0_i32_1 = arith.constant 0 : i32
    return %c0_i32, %c0_i32_0 : i32, i32
  }
  func.func @transform_2(%arg0: i32) -> (i32, i32, i32) {
    %c0_i32 = arith.constant 0 : i32
    %c0_i32_0 = arith.constant 0 : i32
    %c0_i32_1 = arith.constant 0 : i32
    return %arg0, %c0_i32, %c0_i32_0 : i32, i32, i32
  }
}

</mosaic_0001>

<bundles_post_ra>
// kernel: tpu_custom_call.1
= control target key start
LH: loop header
LB: loop body
LE: loop exit
PB: predicated region body
PF: predicated region fallthrough
CT: control target
= control target key end

     0   :  { %7 = vsyncpa [#allocation3], 0  ;;  %s599_s0 = inlined_call_operand.vmem [shape: f32[2,36,256], index: 0, kind: input, shape index: {}]   ;;  %s600_s1 = inlined_call_operand.vmem [shape: f32[4,36], index: 1, kind: input, shape index: {}]   ;;  %s601_s2 = inlined_call_operand.hbm [shape: f32[2,4,256], index: 2, kind: output, shape index: {}]  }
   0x1   :  { %9 = vsyncpa [#allocation3 + $0x1], 0  ;;  %s499_s9 = smov 0   ;;  %s501_s10 = smov 0  }
   0x2   :  { %s503_s11 = smov 0   ;;  %s505_s12 = smov 0  }
   0x3 LB: > { %s520_s13 = sadd.s32 4294967295, %s480_s12   ;;  %s360_s14 = sadd.s32 4294967294, %s480_s12   ;;  %s480_s12 = sphi %s505_s12, %s607_s12   ;;  %s476_s11 = sphi %s503_s11, %s606_s11   ;;  %s472_s10 = sphi %s501_s10, %s605_s10   ;;  %s468_s9 = sphi %s499_s9, %s604_s9  }
   0x4   : > { %s524_s15 = sadd.s32 1, %s480_s12   ;;  %s69_s16 = sadd.s32 1, %s476_s11 }
   0x5   : > { %s66_s17 = ssub.s32 %s480_s12, %s524_s15  ;;  %p79_p0 = scmp.ne.s32.totalorder %s476_s11, %s472_s10 }
   0x6   : > { %p67_p1 = scmp.eq.s32.totalorder %s66_s17, 0  ;;  %p80_p2 = scmp.eq.s32.totalorder %s520_s13, 1 }
   0x7   : > { %p85_p3 = scmp.ne.s32.totalorder %s472_s10, %s468_s9  ;;  %p86_p4 = scmp.eq.s32.totalorder %s360_s14, 1 }
   0x8   : > { %s535_s18 = scalar_select %p67_p1, %s476_s11, %s69_s16  }
   0x9   : > { %p537_p5 = por %p80_p2, %p79_p0  ;;  %p541_p6 = por %p86_p4, %p85_p3 }
   0xa   : > { %p363_p7 = scmp.ge.s32.totalorder %s480_s12, 1  ;;  %p115_p8 = scmp.lt.s32.totalorder %s480_s12, 3 }
   0xc   : > { %p116_p9 = pnand %p363_p7, %p115_p8 }
   0xd   : > { %p137_p10 = scmp.lt.s32.totalorder (!%p116_p9), %s520_s13, 1  ;;  %s134_s28 = sand.u32 (!%p116_p9), 1, %s472_s10  }
   0xe   : > { %119 = sbr.rel (%p116_p9) target bundleno = 416 (0x1a0), region = 28  ;;  %s364_s29 = sshll.u32 (!%p116_p9), %s134_s28, 3 }
   0xf   : > { %s374_s30 = sshll.u32 (!%p116_p9), %s520_s13, 7  ;;  %s136_s3 = scalar_lea.vmem (!%p116_p9), [#allocation2], %s364_s29 }
  0x10   : > { %s301_s4 = sshll.u32 (!%p116_p9), %s136_s3, 4  ;;  %s299_s7 = scalar_lea.hbm (!%p116_p9), %s601_s2, %s374_s30  ;;  %s302_s4 = int_to_ptr.vmem [resolvable:$true] %s301_s4 }
  0x11   : > { %s287_s8 = scalar_lea.sflag (!%p116_p9), [#allocation3], %s134_s28  ;;  %s420_s14 = scalar_lea.vmem (!%p116_p9), %s302_s4, 128 }
  0x12   : > { %p421_p11 = scmp.ne.s32.totalorder (!%p116_p9), %s302_s4, %s420_s14  ;;  %s483_s16 = smov (!%p116_p9), [#allocation2]  }
  0x13   : > { %v482_v0 = vmov 0.0   ;;  %s138_s21 = scalar_select %p137_p10, %s520_s13, 1  ;;  %vm153_vm0 = vcmask 1043456   ;;  %v152_v19 = vld [vmem:[%s600_s1] sm:$0xf]  ;;  %vm176_vm1 = vcmask 293888  }
  0x14   : > { %250 = vmatprep.mubr.f32.mxu0 %v482_v0  ;;  %p422_p12 = pnand %p421_p11, %p537_p5  ;;  %s424_s17 = sshll.u32 %s483_s16, 4  ;;  %s425_s17 = int_to_ptr.vmem [resolvable:$false] %s424_s17 }
  0x15   : > { %s375_s22 = smul.u32 80, %s138_s21  ;;  %s426_s13 = scalar_lea.vmem %s425_s17, 256 }
  0x16   : > { %p423_p13 = pneg %p422_p12  ;;  %p427_p0 = scmp.lt.s32.totalorder %s302_s4, %s425_s17 }
  0x17   : > { %s141_s25 = scalar_lea.vmem %s599_s0, %s375_s22  ;;  %p428_p1 = scmp.lt.s32.totalorder %s426_s13, %s420_s14 }
  0x18   : > { %v151_v1 = vld [vmem:[%s141_s25 + $0x48] sm:$0xf]  ;;  %v150_v2 = vld [vmem:[%s141_s25 + $0x40] sm:$0xf]  ;;  %v149_v3 = vld [vmem:[%s141_s25 + $0x38] sm:$0xff] }
  0x19   : > { %366 = vmatprep.subr.msk.mxu0 %vm153_vm0, %v151_v1  ;;  %v148_v4 = vld [vmem:[%s141_s25 + $0x30] sm:$0xff]  ;;  %v147_v5 = vld [vmem:[%s141_s25 + $0x28] sm:$0xff]  ;;  %v146_v6 = vld [vmem:[%s141_s25 + $0x20] sm:$0xff]  ;;  %p429_p2 = por %p428_p1, %p427_p0 }
  0x1a   : > { %367 = vmatpush1.msk.msra.mxu0 %vm153_vm0, %v150_v2  ;;  %v154_v7 = vsel %vm153_vm0, %v146_v6, 0.0  ;;  %v155_v8 = vsel %vm153_vm0, %v147_v5, 0.0  ;;  %v159_v9 = vmul.f32 %v146_v6, %v146_v6  ;;  %v160_v10 = vmul.f32 %v147_v5, %v147_v5  ;;  %v145_v12 = vld [vmem:[%s141_s25 + $0x18] sm:$0xff]  ;;  %v144_v15 = vld [vmem:[%s141_s25 + $0x10] sm:$0xff]  ;;  %v143_v17 = vld [vmem:[%s141_s25 + $0x8] sm:$0xff] }
  0x1b   : > { %210 = vmatprep.subr.mxu0 %v149_v3  ;;  %v156_v11 = vadd.f32 %v155_v8, %v154_v7  ;;  %v142_v18 = vld [vmem:[%s141_s25] sm:$0xff]  ;;  %p430_p3 = pnand %p429_p2, %p423_p13 }
  0x1c   : > { %211 = vmatpush1.msra.mxu0 %v148_v4  ;;  %v161_v13 = vsel %vm153_vm0, %v159_v9, 0.0  ;;  %v162_v14 = vsel %vm153_vm0, %v160_v10, 0.0 }
  0x1d   : > { %212 = vmatprep.subr.mxu0 %v147_v5  ;;  %157 = vadd.xlane.f32.xlu0 %v156_v11  ;;  %v163_v16 = vadd.f32 %v162_v14, %v161_v13 }
  0x1e   : > { %213 = vmatpush1.msra.mxu0 %v146_v6 }
  0x1f   : > { %214 = vmatprep.subr.mxu0 %v145_v12 }
  0x20   : > { %215 = vmatpush1.msra.mxu0 %v144_v15 }
  0x21   : > { %216 = vmatprep.subr.mxu0 %v143_v17  ;;  %164 = vadd.xlane.f32.xlu0 %v163_v16 }
  0x22   : > { %217 = vmatpush1.msra.mxu0 %v142_v18 }
  0x23   : > { %368 = vmatmul.mubr.msk.f32.vlgmr.msra.gmra.mxu0 %vm176_vm1, %v152_v19 }
  0xa6   : > { %v158_v20 = vpop.xlane.xlu0 %157 }
  0xa7   : > { %v166_v21 = vmul.f32 0.00390625, %v158_v20 }
  0xa9   : > { %v168_v23 = vmul.f32 %v166_v21, %v166_v21  ;;  %v170_v27 = vsub.f32 %v146_v6, %v166_v21  ;;  %v171_v29 = vsub.f32 %v147_v5, %v166_v21 }
  0xaa   : > { %v165_v22 = vpop.xlane.xlu0 %164 }
  0xab   : > { %v167_v24 = vmul.f32 0.00390625, %v165_v22 }
  0xad   : > { %v169_v25 = vsub.f32 %v167_v24, %v168_v23 }
  0xaf   : > { %v172_v26 = vadd.f32 1e-05, %v169_v25 }
  0xb1   : > { %416 = vrsqrt.f32 %v172_v26 }
  0xbe   : > { %v417_v28 = vpop.eup %416 }
  0xbf   : > { %v174_v30 = vmul.f32 %v417_v28, %v170_v27  ;;  %v175_v33 = vmul.f32 %v417_v28, %v171_v29 }
  0xe3   : > { %v252_v31 = vpop.f32.mrf.mxu0 }
  0xe4   : > { %v253_v32 = vadd.f32 %v252_v31, %v174_v30 }
  0xe5   : > { %v254_v34 = vpop.f32.mrf.mxu0 }
  0xe6   : > { %v255_v35 = vadd.f32 %v254_v34, %v175_v33  ;;  %v257_v36 = vsel %vm153_vm0, %v253_v32, 0.0  ;;  %v262_v38 = vmul.f32 %v253_v32, %v253_v32 }
  0xe8   : > { %v258_v37 = vsel %vm153_vm0, %v255_v35, 0.0  ;;  %v263_v39 = vmul.f32 %v255_v35, %v255_v35  ;;  %v264_v42 = vsel %vm153_vm0, %v262_v38, 0.0 }
  0xe9   : > { %v259_v40 = vadd.f32 %v258_v37, %v257_v36 }
  0xea   : > { %v265_v41 = vsel %vm153_vm0, %v263_v39, 0.0 }
  0xeb   : > { %260 = vadd.xlane.f32.xlu1 %v259_v40  ;;  %v266_v43 = vadd.f32 %v265_v41, %v264_v42 }
  0xef   : > { %267 = vadd.xlane.f32.xlu1 %v266_v43 }
 0x174   : > { %v261_v44 = vpop.xlane.xlu1 %260 }
 0x175   : > { %v269_v45 = vmul.f32 0.00390625, %v261_v44 }
 0x177   : > { %v271_v47 = vmul.f32 %v269_v45, %v269_v45  ;;  %v273_v51 = vsub.f32 %v253_v32, %v269_v45  ;;  %v274_v52 = vsub.f32 %v255_v35, %v269_v45 }
 0x178   : > { %v268_v46 = vpop.xlane.xlu1 %267 }
 0x179   : > { %v270_v48 = vmul.f32 0.00390625, %v268_v46 }
 0x17b   : > { %v272_v49 = vsub.f32 %v270_v48, %v271_v47 }
 0x17d   : > { %v275_v50 = vadd.f32 1e-05, %v272_v49 }
 0x17f   : > { %418 = vrsqrt.f32 %v275_v50 }
 0x18c   : > { %v419_v53 = vpop.eup %418 }
 0x18d   : > { %v277_v54 = vmul.f32 %v419_v53, %v273_v51  ;;  %v278_v55 = vmul.f32 %v419_v53, %v274_v52 }
 0x18f   : > { %v279_v56 = vmax.f32 %v277_v54, 0.0  ;;  %v280_v57 = vmax.f32 %v278_v55, 0.0 }
 0x191   : > { %v283_v58 = vcombine.low %v279_v56, %v280_v57 }
 0x193   : > { %285 = vst [vmem:[%s136_s3] sm:$0xff] %v283_v58 }
 0x194   : > { %433 = shalt.err (!%p430_p3)
}
 0x195   : > { %s434_s21 = scalar_lea.hbm %s299_s7, 128  ;;  %s438_s24 = scalar_lea.hbm %s601_s2, 256 }
 0x196   : > { %p435_p4 = scmp.ne.s32.totalorder %s299_s7, %s434_s21  ;;  %p439_p9 = scmp.lt.s32.totalorder %s299_s7, %s601_s2 }
 0x197   : > { %p440_p10 = scmp.lt.s32.totalorder %s438_s24, %s434_s21 }
 0x198   : > { %p436_p7 = pnand %p435_p4, %p537_p5 }
 0x199   : > { %p441_p11 = por %p440_p10, %p439_p9 }
 0x19a   : > { %p437_p8 = pneg %p436_p7 }
 0x19c   : > { %p442_p12 = pnand %p441_p11, %p437_p8 }
 0x19e   : > { %445 = shalt.err (!%p442_p12)
}
 0x19f   : > { %376 = dma.vmem_to_hbm [thread:$0]  (%p537_p5), %s302_s4, 128, %s299_s7, %s287_s8  }
 0x1a0 PF: > { %p382_p13 = scmp.ge.s32.totalorder %s480_s12, 2  ;;  %s313_s27 = sand.u32 1, %s468_s9  }
 0x1a1   : > { %s314_s28 = scalar_lea.sflag [#allocation3], %s313_s27 }
 0x1a2   : > { %p379_p0 = pnand %p382_p13, %p541_p6 }
 0x1a4   : > { %p380_p1 = pneg %p379_p0 }
 0x1a6   : > { %463 = dma.done.wait (%p380_p1), %s314_s28, 128  }
 0x1a7   : > { %465 = vsyncadd (%p380_p1), %s314_s28, 4294967168  ;;  %p12_p2 = scmp.ge.s32.totalorder %s524_s15, 4   ;;  %s604_s9 = smov %s472_s10 }
 0x1a8   : > { %s605_s10 = smov %s476_s11  ;;  %s606_s11 = smov %s535_s18 }
 0x1a9   : > { %s607_s12 = smov %s524_s15  ;;  %14 = sbr.rel (!%p12_p2) target bundleno = 3 (0x3), region = 63 }
 0x1ae   :  { %319 = vsyncpa [#allocation3], 1 }
 0x1af   :  { %321 = vsyncpa [#allocation3 + $0x1], 1 }

</bundles_post_ra>
